<compile_context>
chip_gen: v6e
topology: v6e:2x2x1
jax: 0.10.0
libtpu: 0.0.40
codegen_flags: <defaults>
</compile_context>

<pallas_src>
import jax
import jax.numpy as jnp
from jax.experimental import pallas as pl
from jax.experimental.pallas import tpu as pltpu


def _densenet_kernel(x_ref, w1_ref, b1_ref, w2a_ref, w2b_ref, b2_ref, o_ref):
    """One batch tile of the DenseNet forward; weights are VMEM-resident."""
    x1 = x_ref[...]                                                 # (TB, D)

    # dense1: Linear(D, D) + Hardswish(x) = x * relu6(x + 3) / 6
    z1 = jnp.dot(x1, w1_ref[...], preferred_element_type=jnp.float32) + b1_ref[...]
    h1 = z1 * jnp.clip(z1 + 3.0, 0.0, 6.0) * (1.0 / 6.0)            # (TB, D)

    # dense2 on x2 = [x1, h1]: concat folded into split weight W2 = [W2a; W2b]
    z2 = (jnp.dot(x1, w2a_ref[...], preferred_element_type=jnp.float32)
          + jnp.dot(h1, w2b_ref[...], preferred_element_type=jnp.float32)
          + b2_ref[...])
    h2 = z2 * jnp.clip(z2 + 3.0, 0.0, 6.0) * (1.0 / 6.0)            # (TB, 2D)

    # x3 = [x2, h2] = [x1, h1, h2] : build in-register, one lane-dense store.
    o_ref[...] = jnp.concatenate([x1, h1, h2], axis=-1).astype(o_ref.dtype)


def densenet_forward(x1, params, *, block_b=None):
    """x1: (B, lay_dim) -> (B, 4 * lay_dim)."""
    B, D = x1.shape
    w1, b1, w2, b2 = params
    assert w1.shape == (D, D) and w2.shape == (2 * D, 2 * D)

    # Split W2 so the x2 = cat([x1, h1]) concat never materializes.
    w2a = w2[:D, :]            # rows multiplying x1
    w2b = w2[D:, :]            # rows multiplying h1

    if block_b is None:
        # Large tiles amortize the ~0.35us/step overhead; weights are ~13 KB
        # so VMEM is never the constraint even with double-buffered activations
        # (re-derive only if tiles grow toward v7x's 64 MiB VMEM).
        block_b = min(B, 2048)

    # Pad batch to a multiple of the batch tile.
    n_blocks = pl.cdiv(B, block_b)
    Bp = n_blocks * block_b
    x1p = jnp.pad(x1, ((0, Bp - B), (0, 0))) if Bp != B else x1

    resident = lambda arr: pl.BlockSpec(arr.shape, lambda i: (0, 0))

    out = pl.pallas_call(
        _densenet_kernel,
        out_shape=jax.ShapeDtypeStruct((Bp, 4 * D), jnp.float32),
        grid=(n_blocks,),
        in_specs=[
            pl.BlockSpec((block_b, D), lambda i: (i, 0)),   # x tile (pipelined)
            resident(w1), resident(b1),
            resident(w2a), resident(w2b), resident(b2),
        ],
        out_specs=pl.BlockSpec((block_b, 4 * D), lambda i: (i, 0)),
        compiler_params=pltpu.CompilerParams(
            dimension_semantics=("parallel",)),             # dual-TC on v7x
    )(x1p, w1, b1, w2a, w2b, b2)

    return out[:B]


def init_params(key, lay_dim):
    """Deterministic synthetic parameters (PyTorch-style uniform init)."""
    ks = jax.random.split(key, 4)

    def lin(kw, kb, fan_in, fan_out):
        bound = 1.0 / jnp.sqrt(fan_in)
        w = jax.random.uniform(kw, (fan_in, fan_out), jnp.float32, -bound, bound)
        b = jax.random.uniform(kb, (1, fan_out), jnp.float32, -bound, bound)
        return w, b

    w1, b1 = lin(ks[0], ks[1], lay_dim, lay_dim)
    w2, b2 = lin(ks[2], ks[3], 2 * lay_dim, 2 * lay_dim)
    return (w1, b1, w2, b2)


def _reference(x1, params):
    """Pure-JAX reference mirroring the PyTorch forward exactly."""
    w1, b1, w2, b2 = params
    hsw = lambda v: v * jnp.clip(v + 3.0, 0.0, 6.0) / 6.0
    h1 = hsw(x1 @ w1 + b1)
    x2 = jnp.concatenate([x1, h1], axis=1)
    h2 = hsw(x2 @ w2 + b2)
    return jnp.concatenate([x2, h2], axis=1)


if __name__ == "__main__":
    key = jax.random.PRNGKey(0)
    k_p, k_x = jax.random.split(key, 2)

    batch, lay_dim = 16, 32          # out_dim = 4 * lay_dim = 128 (lane-dense)

    params = init_params(k_p, lay_dim)
    x1 = jax.random.normal(k_x, (batch, lay_dim), jnp.float32)

    # block_b=8 -> 2 grid steps, exercising the pipelined batch grid.
    out = densenet_forward(x1, params, block_b=8)
    out = jax.block_until_ready(out)

    ref = _reference(x1, params)
    assert out.shape == (batch, 4 * lay_dim), out.shape
    assert jnp.allclose(out, ref, atol=1e-5, rtol=1e-5), (out, ref)

    print("KERNEL_OK")
</pallas_src>

<mosaic_0001>
module attributes {stable_mosaic.version = 11 : i64} {
  func.func @_densenet_kernel(%arg0: i32, %arg1: memref<8x32xf32, #tpu.memory_space<vmem>>, %arg2: memref<32x32xf32, #tpu.memory_space<vmem>>, %arg3: memref<1x32xf32, #tpu.memory_space<vmem>>, %arg4: memref<32x64xf32, #tpu.memory_space<vmem>>, %arg5: memref<32x64xf32, #tpu.memory_space<vmem>>, %arg6: memref<1x64xf32, #tpu.memory_space<vmem>>, %arg7: memref<8x128xf32, #tpu.memory_space<vmem>>) attributes {dimension_semantics = [#tpu.dimension_semantics<parallel>], iteration_bounds = array<i64: 2>, scalar_prefetch = 0 : i64, scratch_operands = 0 : i64, tpu.core_type = #tpu.core_type<tc>, window_params = [{transform_indices = @transform_0, window_bounds = array<i64: 8, 32>}, {pipeline_mode = #tpu.pipeline_mode<synchronous>, transform_indices = @transform_1, window_bounds = array<i64: 32, 32>}, {pipeline_mode = #tpu.pipeline_mode<synchronous>, transform_indices = @transform_2, window_bounds = array<i64: 1, 32>}, {pipeline_mode = #tpu.pipeline_mode<synchronous>, transform_indices = @transform_3, window_bounds = array<i64: 32, 64>}, {pipeline_mode = #tpu.pipeline_mode<synchronous>, transform_indices = @transform_4, window_bounds = array<i64: 32, 64>}, {pipeline_mode = #tpu.pipeline_mode<synchronous>, transform_indices = @transform_5, window_bounds = array<i64: 1, 64>}, {transform_indices = @transform_6, window_bounds = array<i64: 8, 128>}]} {
    %c0 = arith.constant 0 : index
    %c0_0 = arith.constant 0 : index
    %0 = vector.load %arg1[%c0, %c0_0] : memref<8x32xf32, #tpu.memory_space<vmem>>, vector<8x32xf32>
    %c0_1 = arith.constant 0 : index
    %c0_2 = arith.constant 0 : index
    %1 = vector.load %arg2[%c0_1, %c0_2] : memref<32x32xf32, #tpu.memory_space<vmem>>, vector<32x32xf32>
    %cst = arith.constant dense<0.000000e+00> : vector<8x32xf32>
    %2 = tpu.matmul %0, %1, %cst {dimension_numbers = #tpu.dot_dimension_numbers<[1], [0], [0], [1], [0, 0, 1, 1], [], []>} : vector<8x32xf32>, vector<32x32xf32>, vector<8x32xf32> -> vector<8x32xf32>
    %c0_3 = arith.constant 0 : index
    %c0_4 = arith.constant 0 : index
    %3 = vector.load %arg3[%c0_3, %c0_4] : memref<1x32xf32, #tpu.memory_space<vmem>>, vector<1x32xf32>
    %4 = vector.broadcast %3 : vector<1x32xf32> to vector<8x32xf32>
    %5 = arith.addf %2, %4 : vector<8x32xf32>
    %cst_5 = arith.constant 3.000000e+00 : f32
    %6 = vector.broadcast %cst_5 : f32 to vector<8x32xf32>
    %7 = arith.addf %5, %6 : vector<8x32xf32>
    %cst_6 = arith.constant 0.000000e+00 : f32
    %cst_7 = arith.constant 6.000000e+00 : f32
    %8 = vector.broadcast %cst_6 : f32 to vector<8x32xf32>
    %9 = arith.maximumf %8, %7 : vector<8x32xf32>
    %10 = vector.broadcast %cst_7 : f32 to vector<8x32xf32>
    %11 = arith.minimumf %10, %9 : vector<8x32xf32>
    %12 = arith.mulf %5, %11 : vector<8x32xf32>
    %cst_8 = arith.constant 0.166666672 : f32
    %13 = vector.broadcast %cst_8 : f32 to vector<8x32xf32>
    %14 = arith.mulf %12, %13 : vector<8x32xf32>
    %c0_9 = arith.constant 0 : index
    %c0_10 = arith.constant 0 : index
    %15 = vector.load %arg4[%c0_9, %c0_10] : memref<32x64xf32, #tpu.memory_space<vmem>>, vector<32x64xf32>
    %cst_11 = arith.constant dense<0.000000e+00> : vector<8x64xf32>
    %16 = tpu.matmul %0, %15, %cst_11 {dimension_numbers = #tpu.dot_dimension_numbers<[1], [0], [0], [1], [0, 0, 1, 1], [], []>} : vector<8x32xf32>, vector<32x64xf32>, vector<8x64xf32> -> vector<8x64xf32>
    %c0_12 = arith.constant 0 : index
    %c0_13 = arith.constant 0 : index
    %17 = vector.load %arg5[%c0_12, %c0_13] : memref<32x64xf32, #tpu.memory_space<vmem>>, vector<32x64xf32>
    %cst_14 = arith.constant dense<0.000000e+00> : vector<8x64xf32>
    %18 = tpu.matmul %14, %17, %cst_14 {dimension_numbers = #tpu.dot_dimension_numbers<[1], [0], [0], [1], [0, 0, 1, 1], [], []>} : vector<8x32xf32>, vector<32x64xf32>, vector<8x64xf32> -> vector<8x64xf32>
    %19 = arith.addf %16, %18 : vector<8x64xf32>
    %c0_15 = arith.constant 0 : index
    %c0_16 = arith.constant 0 : index
    %20 = vector.load %arg6[%c0_15, %c0_16] : memref<1x64xf32, #tpu.memory_space<vmem>>, vector<1x64xf32>
    %21 = vector.broadcast %20 : vector<1x64xf32> to vector<8x64xf32>
    %22 = arith.addf %19, %21 : vector<8x64xf32>
    %cst_17 = arith.constant 3.000000e+00 : f32
    %23 = vector.broadcast %cst_17 : f32 to vector<8x64xf32>
    %24 = arith.addf %22, %23 : vector<8x64xf32>
    %cst_18 = arith.constant 0.000000e+00 : f32
    %cst_19 = arith.constant 6.000000e+00 : f32
    %25 = vector.broadcast %cst_18 : f32 to vector<8x64xf32>
    %26 = arith.maximumf %25, %24 : vector<8x64xf32>
    %27 = vector.broadcast %cst_19 : f32 to vector<8x64xf32>
    %28 = arith.minimumf %27, %26 : vector<8x64xf32>
    %29 = arith.mulf %22, %28 : vector<8x64xf32>
    %cst_20 = arith.constant 0.166666672 : f32
    %30 = vector.broadcast %cst_20 : f32 to vector<8x64xf32>
    %31 = arith.mulf %29, %30 : vector<8x64xf32>
    %32 = tpu.concatenate %0, %14, %31 in 1 : vector<8x32xf32>, vector<8x32xf32>, vector<8x64xf32> -> vector<8x128xf32>
    %c0_21 = arith.constant 0 : index
    %c0_22 = arith.constant 0 : index
    %33 = vector.load %arg7[%c0_21, %c0_22] : memref<8x128xf32, #tpu.memory_space<vmem>>, vector<8x128xf32>
    tpu.vector_store %arg7[%c0_21, %c0_22], %32 {strides = array<i32>} : memref<8x128xf32, #tpu.memory_space<vmem>>, vector<8x128xf32>,
    return
  }
  func.func @transform_0(%arg0: i32) -> (i32, i32) {
    %c0_i32 = arith.constant 0 : i32
    %c0_i32_0 = arith.constant 0 : i32
    return %arg0, %c0_i32 : i32, i32
  }
  func.func @transform_1(%arg0: i32) -> (i32, i32) {
    %c0_i32 = arith.constant 0 : i32
    %c0_i32_0 = arith.constant 0 : i32
    %c0_i32_1 = arith.constant 0 : i32
    return %c0_i32, %c0_i32_0 : i32, i32
  }
  func.func @transform_2(%arg0: i32) -> (i32, i32) {
    %c0_i32 = arith.constant 0 : i32
    %c0_i32_0 = arith.constant 0 : i32
    %c0_i32_1 = arith.constant 0 : i32
    return %c0_i32, %c0_i32_0 : i32, i32
  }
  func.func @transform_3(%arg0: i32) -> (i32, i32) {
    %c0_i32 = arith.constant 0 : i32
    %c0_i32_0 = arith.constant 0 : i32
    %c0_i32_1 = arith.constant 0 : i32
    return %c0_i32, %c0_i32_0 : i32, i32
  }
  func.func @transform_4(%arg0: i32) -> (i32, i32) {
    %c0_i32 = arith.constant 0 : i32
    %c0_i32_0 = arith.constant 0 : i32
    %c0_i32_1 = arith.constant 0 : i32
    return %c0_i32, %c0_i32_0 : i32, i32
  }
  func.func @transform_5(%arg0: i32) -> (i32, i32) {
    %c0_i32 = arith.constant 0 : i32
    %c0_i32_0 = arith.constant 0 : i32
    %c0_i32_1 = arith.constant 0 : i32
    return %c0_i32, %c0_i32_0 : i32, i32
  }
  func.func @transform_6(%arg0: i32) -> (i32, i32) {
    %c0_i32 = arith.constant 0 : i32
    %c0_i32_0 = arith.constant 0 : i32
    return %arg0, %c0_i32 : i32, i32
  }
}

</mosaic_0001>

<bundles_post_ra>
// kernel: tpu_custom_call.1
= control target key start
LH: loop header
LB: loop body
LE: loop exit
PB: predicated region body
PF: predicated region fallthrough
CT: control target
= control target key end

     0   :  { %s1270_s0 = inlined_call_operand.hbm [shape: f32[16,32], index: 0, kind: input, shape index: {}]   ;;  %s1271_s1 = inlined_call_operand.hbm [shape: f32[32,32], index: 1, kind: input, shape index: {}]   ;;  %s1272_s2 = inlined_call_operand.vmem [shape: f32[1,32], index: 2, kind: input, shape index: {}]   ;;  %s1273_s3 = inlined_call_operand.hbm [shape: f32[32,64], index: 3, kind: input, shape index: {}]   ;;  %s1274_s4 = inlined_call_operand.hbm [shape: f32[32,64], index: 4, kind: input, shape index: {}]   ;;  %s1275_s5 = inlined_call_operand.vmem [shape: f32[1,64], index: 5, kind: input, shape index: {}]   ;;  %s1276_s6 = inlined_call_operand.hbm [shape: f32[16,128], index: 6, kind: output, shape index: {}]  }
   0x1   :  { %1281 = sst [smem:[#allocation15_spill]] %s1271_s1 }
   0x2   :  { %11 = vsyncpa [#allocation3], 0 }
   0x3   :  { %13 = vsyncpa [#allocation3 + $0x1], 0 }
   0x4   :  { %14 = vsyncpa [#allocation6], 0 }
   0x5   :  { %15 = vsyncpa [#allocation9], 0 }
   0x6   :  { %16 = vsyncpa [#allocation4], 0 }
   0x7   :  { %18 = vsyncpa [#allocation4 + $0x1], 0  ;;  %s1070_s21 = smov 0   ;;  %s1072_s22 = smov 0  }
   0x8   :  { %s1074_s23 = smov 0   ;;  %s1076_s24 = smov 0  }
   0x9 LB: > { %s1091_s25 = sadd.s32 4294967295, %s1022_s24   ;;  %s690_s26 = sadd.s32 4294967294, %s1022_s24   ;;  %s1022_s24 = sphi %s1076_s24, %s1302_s24   ;;  %s1018_s23 = sphi %s1074_s23, %s1301_s23   ;;  %s1014_s22 = sphi %s1072_s22, %s1300_s22   ;;  %s1010_s21 = sphi %s1070_s21, %s1299_s21  }
   0xa   : > { %p44_p0 = scmp.ne.s32.totalorder %s1014_s22, %s1010_s21  ;;  %p1277_p1 = scmp.eq.s32.totalorder %s1091_s25, 0 }
   0xb   : > { %p179_p3 = scmp.eq.s32.totalorder %s690_s26, 1  ;;  %p691_p5 = scmp.ge.s32.totalorder %s1022_s24, 1 }
   0xc   : > { %p1100_p4 = por %p1277_p1, %p44_p0  ;;  %p186_p7 = scmp.lt.s32.totalorder %s1022_s24, 3 }
   0xd   : > { %p1105_p6 = por %p179_p3, %p44_p0  ;;  %s1024_s30 = smov [#allocation5]  }
   0xe   : > { %s1282_s27 = scalar_select %p1100_p4, 1, 0 }
   0xf   : > { %s1283_s28 = scalar_select %p1105_p6, 1, 0 }
  0x10   : > { %p1110_p8 = pnand %p691_p5, %p186_p7  ;;  %s198_s7 = sshll.u32 %s1024_s30, 4  ;;  %s199_s7 = int_to_ptr.vmem [resolvable:$true] %s198_s7 }
  0x11   : > { %s1025_s9 = smov [#allocation7]   ;;  %s1026_s11 = smov [#allocation8]  }
  0x12   : > { %s1284_s29 = scalar_select %p1110_p8, 1, 0 }
  0x13   : > { %p777_p9 = pneg %p1110_p8  ;;  %s214_s10 = sshll.u32 %s1025_s9, 4  ;;  %s215_s10 = int_to_ptr.vmem [resolvable:$true] %s214_s10 }
  0x14   : > { %s227_s12 = sshll.u32 %s1026_s11, 4  ;;  %s855_s13 = scalar_lea.vmem %s199_s7, 512  ;;  %s228_s12 = int_to_ptr.vmem [resolvable:$true] %s227_s12 }
  0x15   : > { %p1119_p11 = pnand %p777_p9, %p1277_p1  ;;  %p856_p13 = scmp.ne.s32.totalorder %s199_s7, %s855_s13 }
  0x16   : > { %p863_p5 = scmp.lt.s32.totalorder %s199_s7, %s199_s7  ;;  %p864_p7 = scmp.lt.s32.totalorder %s855_s13, %s855_s13 }
  0x17   : > { %p846_p12 = pneg %p1119_p11 }
  0x18   : > { %p865_p9 = por %p864_p7, %p863_p5 }
  0x19   : > { %p858_p0 = pnand %p856_p13, %p846_p12 }
  0x1b   : > { %p859_p3 = pneg %p858_p0 }
  0x1d   : > { %p866_p10 = pnand %p865_p9, %p859_p3 }
  0x1f   : > { %869 = shalt.err (!%p866_p10)
}
  0x20   : > { %s1027_s14 = smov 128   ;;  %s1028_s15 = smov 8  }
  0x21   : > { %s1286_s1 = sld [smem:[#allocation15_spill]]  ;;  %s881_s18 = scalar_lea.vmem %s215_s10, 512 }
  0x22   : > { %p882_p1 = scmp.ne.s32.totalorder %s215_s10, %s881_s18  ;;  %p889_p2 = scmp.lt.s32.totalorder %s215_s10, %s215_s10 }
  0x23   : > { %p890_p6 = scmp.lt.s32.totalorder %s881_s18, %s881_s18 }
  0x24   : > { %p884_p13 = pnand %p882_p1, %p846_p12 }
  0x25   : > { %p891_p5 = por %p890_p6, %p889_p2 }
  0x26   : > { %p885_p0 = pneg %p884_p13 }
  0x27   : > { %780 = dma.hbm_to_vmem [thread:$0]  (!%p1119_p11), %s1286_s1, 512, %s199_s7, [#allocation6], %s1027_s14, %s1027_s14, %s1028_s15  }
  0x28   : > { %p892_p3 = pnand %p891_p5, %p885_p0 }
  0x2a   : > { %895 = shalt.err (!%p892_p3)
}
  0x2b   : > { %783 = dma.hbm_to_vmem [thread:$0]  (!%p1119_p11), %s1273_s3, 512, %s215_s10, [#allocation6], %s1027_s14, %s1027_s14, %s1028_s15  }
  0x2c   : > { %s907_s26 = scalar_lea.vmem %s228_s12, 512  ;;  %p915_p9 = scmp.lt.s32.totalorder %s228_s12, %s228_s12 }
  0x2d   : > { %p908_p10 = scmp.ne.s32.totalorder %s228_s12, %s907_s26  ;;  %p916_p13 = scmp.lt.s32.totalorder %s907_s26, %s907_s26 }
  0x2f   : > { %p910_p7 = pnand %p908_p10, %p846_p12  ;;  %p917_p4 = por %p916_p13, %p915_p9 }
  0x31   : > { %p911_p1 = pneg %p910_p7 }
  0x33   : > { %p918_p2 = pnand %p917_p4, %p911_p1 }
  0x35   : > { %921 = shalt.err (!%p918_p2)
}
  0x36   : > { %786 = dma.hbm_to_vmem [thread:$0]  (!%p1119_p11), %s1274_s4, 512, %s228_s12, [#allocation9], %s1027_s14, %s1027_s14, %s1028_s15  }
  0x37   : > { %s1150_s9 = sadd.s32 1, %s1022_s24   ;;  %s31_s8 = sadd.s32 1, %s1018_s23 }
  0x38   : > { %s28_s10 = ssub.s32 %s1022_s24, %s1150_s9  ;;  %p38_p6 = scmp.ne.s32.totalorder %s1018_s23, %s1014_s22 }
  0x39   : > { %p29_p4 = scmp.eq.s32.totalorder %s28_s10, 0  ;;  %p39_p12 = scmp.eq.s32.totalorder %s1022_s24, 0 }
  0x3a   : > { %p798_p0 = scmp.lt.s32.totalorder %s1022_s24, 2  ;;  %p1287_p3 = scmp.eq.s32.totalorder %s1091_s25, 1 }
  0x3b   : > { %s1160_s11 = scalar_select %p29_p4, %s1018_s23, %s31_s8  }
  0x3c   : > { %p40_p5 = por %p39_p12, %p38_p6  ;;  %p1164_p10 = por %p1287_p3, %p38_p6 }
  0x3d   : > { %s244_s16 = sand.u32 1, %s1018_s23   ;;  %s697_s17 = sshll.u32 %s1022_s24, 7 }
  0x3e   : > { %s1288_s13 = scalar_select %p1164_p10, 1, 0 }
  0x3f   : > { %s696_s12 = sshll.u32 %s244_s16, 3  ;;  %s1173_s18 = scalar_lea.hbm %s1270_s0, %s697_s17 }
  0x40   : > { %s248_s19 = scalar_lea.vmem [#allocation2], %s696_s12  ;;  %p1175_p11 = pnand %p798_p0, %p40_p5 }
  0x41   : > { %s255_s20 = sshll.u32 %s248_s19, 4  ;;  %s245_s30 = scalar_lea.sflag [#allocation3], %s244_s16  ;;  %s256_s20 = int_to_ptr.vmem [resolvable:$true] %s255_s20 }
  0x42   : > { %s922_s7 = scalar_lea.hbm %s1173_s18, 128  ;;  %p924_p1 = pneg %p1175_p11 }
  0x43   : > { %p923_p7 = scmp.ne.s32.totalorder %s1173_s18, %s922_s7  ;;  %s927_s17 = scalar_lea.hbm %s1270_s0, 256 }
  0x44   : > { %p928_p2 = scmp.lt.s32.totalorder %s1173_s18, %s1270_s0  ;;  %p929_p4 = scmp.lt.s32.totalorder %s927_s17, %s922_s7 }
  0x45   : > { %p925_p9 = pnand %p924_p1, %p923_p7 }
  0x46   : > { %p930_p6 = por %p929_p4, %p928_p2 }
  0x47   : > { %p926_p13 = pneg %p925_p9 }
  0x49   : > { %p931_p12 = pnand %p930_p6, %p926_p13 }
  0x4b   : > { %934 = shalt.err (!%p931_p12)
}
  0x4c   : > { %s935_s15 = scalar_lea.vmem %s256_s20, 128  ;;  %s1029_s16 = smov [#allocation2]  }
  0x4d   : > { %p936_p0 = scmp.ne.s32.totalorder %s256_s20, %s935_s15  ;;  %s940_s19 = sshll.u32 %s1029_s16, 4  ;;  %s941_s19 = int_to_ptr.vmem [resolvable:$false] %s940_s19 }
  0x4e   : > { %s942_s1 = scalar_lea.vmem %s941_s19, 256  ;;  %p943_p7 = scmp.lt.s32.totalorder %s256_s20, %s941_s19 }
  0x4f   : > { %p938_p5 = pnand %p936_p0, %p924_p1  ;;  %p944_p9 = scmp.lt.s32.totalorder %s942_s1, %s935_s15 }
  0x51   : > { %p939_p3 = pneg %p938_p5  ;;  %p945_p10 = por %p944_p9, %p943_p7 }
  0x53   : > { %p946_p8 = pnand %p945_p10, %p939_p3 }
  0x55   : > { %949 = shalt.err (!%p946_p8)
}
  0x56   : > { %790 = dma.hbm_to_vmem [thread:$0]  (!%p1175_p11), %s1173_s18, 128, %s256_s20, %s245_s30  }
  0x57   : > { %p1290_p13 = scmp.ne.s32.totalorder %s1284_s29, 0 }
  0x58   : > { %s1196_s7 = sand.u32 (!%p1290_p13), 1, %s1014_s22   ;;  %p1291_p10 = scmp.ne.s32.totalorder (!%p1290_p13), %s1282_s27, 0 }
  0x59   : > { %264 = sbr.rel (%p1290_p13) target bundleno = 652 (0x28c), region = 44  ;;  %s699_s10 = sshll.u32 (!%p1290_p13), %s1196_s7, 3 }
  0x5a   : > { %s267_s8 = scalar_lea.sflag (!%p1290_p13), [#allocation3], %s1196_s7  ;;  %s270_s1 = scalar_lea.vmem (!%p1290_p13), [#allocation2], %s699_s10 }
  0x5e   : > { %993 = dma.done.wait (%p1291_p10), %s267_s8, 128  }
  0x5f   : > { %995 = vsyncadd (%p1291_p10), %s267_s8, 4294967168  ;;  %p1292_p8 = scmp.eq.s32.totalorder %s1091_s25, 0 }
  0x61   : > { %997 = dma.done.wait (%p1292_p8), [#allocation6], 1024   ;;  %p1293_p11 = pmov %p1292_p8 }
  0x62   : > { %p1294_p1 = pmov %p1292_p8 }
  0x63   : > { %999 = vsyncadd (%p1293_p11), [#allocation6], 4294966272 }
  0x64   : > { %1001 = dma.done.wait (%p1294_p1), [#allocation9], 512   ;;  %p1295_p2 = pmov %p1294_p1 }
  0x65   : > { %v1030_v0 = vmov 0.0   ;;  %vm1031_vm0 = vmmov 0   ;;  %v315_v1 = vld [vmem:[#allocation5 + $0x18] sm:$0xff]  ;;  %v314_v2 = vld [vmem:[#allocation5 + $0x10] sm:$0xff]  ;;  %v313_v3 = vld [vmem:[#allocation5 + $0x8] sm:$0xff]  ;;  %vm323_vm1 = vcmask 261120  }
  0x66   : > { %1003 = vsyncadd (%p1295_p2), [#allocation9], 4294966784  ;;  %728 = vmatprep.subr.mxu0 %v1030_v0  ;;  %736 = vmatprep.mubr.msk.f32.mxu0 %vm1031_vm0, %v1030_v0  ;;  %v312_v4 = vld [vmem:[#allocation5] sm:$0xff]  ;;  %v311_v5 = vld [vmem:[%s270_s1] sm:$0xff]  ;;  %s1032_s18 = smov 32   ;;  %s1033_s30 = smov 64  }
  0x67   : > { %739 = vmatprep.subr.mxu1 %v1030_v0  ;;  %747 = vmatprep.mubr.msk.f32.mxu1 %vm1031_vm0, %v1030_v0  ;;  %v405_v6 = vld [vmem:[#allocation7 + $0x18] sm:$0xff]  ;;  %v404_v8 = vld [vmem:[#allocation7 + $0x10] sm:$0xff]  ;;  %v403_v10 = vld [vmem:[#allocation7 + $0x8] sm:$0xff]  ;;  %s710_s17 = sshll.u32 %s1091_s25, 7  ;;  %s310_s14 = scalar_lea.vmem [#allocation10], %s699_s10  ;;  %vm574_vm2 = vcmask 523264  }
  0x68   : > { %729 = vmatpush3.msra.mxu0 %v315_v1  ;;  %v409_v7 = vld [vmem:[#allocation8 + $0x18] sm:$0xff]  ;;  %v408_v9 = vld [vmem:[#allocation8 + $0x10] sm:$0xff]  ;;  %v407_v11 = vld [vmem:[#allocation8 + $0x8] sm:$0xff]  ;;  %s591_s12 = sshll.u32 %s310_s14, 4  ;;  %s1233_s19 = scalar_lea.hbm %s1276_s6, %s710_s17  ;;  %s592_s12 = int_to_ptr.vmem [resolvable:$true] %s591_s12 }
  0x69   : > { %730 = vmatprep.subr.mxu0 %v1030_v0  ;;  %740 = vmatpush3.msra.mxu1 %v409_v7  ;;  %v402_v12 = vld [vmem:[#allocation7] sm:$0xff]  ;;  %v704_v14 = vld [vmem:[%s1272_s2] ss:$0 sm:$0xff]  ;;  %s578_s8 = scalar_lea.sflag [#allocation4], %s1196_s7  ;;  %s950_s1 = scalar_lea.vmem %s592_s12, 128 }
  0x6a   : > { %731 = vmatpush3.msra.mxu0 %v314_v2  ;;  %741 = vmatprep.subr.mxu1 %v1030_v0  ;;  %v406_v13 = vld [vmem:[#allocation8] sm:$0xff]  ;;  %v708_v26 = vld [vmem:[%s1275_s5] ss:$0 sm:$0xff]  ;;  %p951_p4 = scmp.ne.s32.totalorder %s592_s12, %s950_s1  ;;  %p1296_p6 = scmp.ne.s32.totalorder %s1288_s13, 0 }
  0x6b   : > { %732 = vmatprep.subr.mxu0 %v1030_v0  ;;  %742 = vmatpush3.msra.mxu1 %v408_v9  ;;  %s1034_s25 = smov [#allocation10]  }
  0x6c   : > { %733 = vmatpush3.msra.mxu0 %v313_v3  ;;  %743 = vmatprep.subr.mxu1 %v1030_v0  ;;  %p952_p12 = pnand %p951_p4, %p1296_p6  ;;  %s954_s10 = sshll.u32 %s1034_s25, 4  ;;  %s955_s10 = int_to_ptr.vmem [resolvable:$false] %s954_s10 }
  0x6d   : > { %734 = vmatprep.subr.mxu0 %v1030_v0  ;;  %744 = vmatpush3.msra.mxu1 %v407_v11  ;;  %s956_s27 = scalar_lea.vmem %s955_s10, 256  ;;  %p957_p5 = scmp.lt.s32.totalorder %s592_s12, %s955_s10 }
  0x6e   : > { %735 = vmatpush3.msra.mxu0 %v312_v4  ;;  %745 = vmatprep.subr.mxu1 %v1030_v0  ;;  %p953_p0 = pneg %p952_p12  ;;  %p958_p3 = scmp.lt.s32.totalorder %s956_s27, %s950_s1 }
  0x6f   : > { %737 = vmatmul.mubr.msk.f32.vlgmr.msra.gmra.mxu0 %vm323_vm1, %v311_v5  ;;  %750 = vmatprep.subr.mxu0 %v1030_v0 }
  0x70   : > { %758 = vmatprep.mubr.msk.f32.mxu0 %vm1031_vm0, %v1030_v0  ;;  %751 = vmatpush3.msra.mxu0 %v405_v6  ;;  %p959_p7 = por %p958_p3, %p957_p5 }
  0x71   : > { %752 = vmatprep.subr.mxu0 %v1030_v0  ;;  %746 = vmatpush3.msra.mxu1 %v406_v13 }
  0x72   : > { %753 = vmatpush3.msra.mxu0 %v404_v8  ;;  %p960_p9 = pnand %p959_p7, %p953_p0 }
  0x73   : > { %754 = vmatprep.subr.mxu0 %v1030_v0 }
  0x74   : > { %755 = vmatpush3.msra.mxu0 %v403_v10 }
  0x75   : > { %756 = vmatprep.subr.mxu0 %v1030_v0 }
  0x76   : > { %757 = vmatpush3.msra.mxu0 %v402_v12 }
  0x77   : > { %759 = vmatmul.mubr.msk.f32.vlgmr.msra.gmra.mxu0 %vm323_vm1, %v311_v5 }
 0x12f   : > { %v393_v15 = vpop.f32.mrf.mxu0 }
 0x130   : > { %v394_v16 = vadd.f32 %v704_v14, %v393_v15 }
 0x131   : > { %v738_v17 = vpop.f32.mrf.mxu0 }
 0x132   : > { %v397_v18 = vadd.f32 3.0, %v394_v16 }
 0x134   : > { %v398_v19 = vmax.f32 %v397_v18, 0.0 }
 0x136   : > { %v399_v20 = vmin.f32 %v398_v19, 6.0 }
 0x137   : > { %v549_v23 = vpop.f32.mrf.mxu0 }
 0x138   : > { %v400_v21 = vmul.f32 %v399_v20, %v394_v16 }
 0x139   : > { %v760_v24 = vpop.f32.mrf.mxu0 }
 0x13a   : > { %v401_v22 = vmul.f32 0.16666667, %v400_v21 }
 0x13c   : > { %566 = vrot.lane.b32.xlu0 %v401_v22, %s1032_s18  ;;  %748 = vmatmul.mubr.msk.f32.vlgmr.msra.gmra.mxu1 %vm323_vm1, %v401_v22 }
 0x1ae   : > { %v567_v35 = vpop.permute.xlu0 %566 }
 0x1af   : > { %v573_v36 = vsel %vm323_vm1, %v311_v5, %v567_v35 }
 0x1fc   : > { %v479_v25 = vpop.f32.mrf.mxu1 }
 0x1fd   : > { %v550_v27 = vadd.f32 %v549_v23, %v479_v25 }
 0x1fe   : > { %v749_v28 = vpop.f32.mrf.mxu1 }
 0x1ff   : > { %v560_v29 = vadd.f32 %v708_v26, %v550_v27 }
 0x201   : > { %v561_v30 = vadd.f32 3.0, %v560_v29 }
 0x203   : > { %v562_v31 = vmax.f32 %v561_v30, 0.0 }
 0x205   : > { %v563_v32 = vmin.f32 %v562_v31, 6.0 }
 0x207   : > { %v564_v33 = vmul.f32 %v563_v32, %v560_v29 }
 0x209   : > { %v565_v34 = vmul.f32 0.16666667, %v564_v33 }
 0x20b   : > { %570 = vrot.lane.b32.xlu0 %v565_v34, %s1033_s30 }
 0x27d   : > { %v571_v37 = vpop.permute.xlu0 %570 }
 0x27e   : > { %v575_v38 = vsel %vm574_vm2, %v573_v36, %v571_v37 }
 0x27f   : > { %576 = vst [vmem:[%s310_s14] sm:$0xff] %v575_v38 }
 0x280   : > { %963 = shalt.err (!%p960_p9)
}
 0x281   : > { %s964_s29 = scalar_lea.hbm %s1233_s19, 128  ;;  %s968_s20 = scalar_lea.hbm %s1276_s6, 256 }
 0x282   : > { %p965_p13 = scmp.ne.s32.totalorder %s1233_s19, %s964_s29  ;;  %p969_p11 = scmp.lt.s32.totalorder %s1233_s19, %s1276_s6 }
 0x283   : > { %p970_p1 = scmp.lt.s32.totalorder %s968_s20, %s964_s29 }
 0x284   : > { %p966_p10 = pnand %p965_p13, %p1296_p6 }
 0x285   : > { %p971_p2 = por %p970_p1, %p969_p11 }
 0x286   : > { %p967_p8 = pneg %p966_p10 }
 0x288   : > { %p972_p4 = pnand %p971_p2, %p967_p8 }
 0x28a   : > { %975 = shalt.err (!%p972_p4)
}
 0x28b   : > { %775 = dma.vmem_to_hbm [thread:$0]  (%p1296_p6), %s592_s12, 128, %s1233_s19, %s578_s8  }
 0x28c PF: > { %s603_s17 = sand.u32 1, %s1010_s21   ;;  %p1297_p12 = scmp.ne.s32.totalorder %s1283_s28, 0 }
 0x28d   : > { %p1298_p0 = scmp.ge.s32.totalorder %s1022_s24, 2  ;;  %s604_s14 = scalar_lea.sflag [#allocation4], %s603_s17 }
 0x28f   : > { %p792_p5 = pnand %p1298_p0, %p1297_p12 }
 0x291   : > { %p793_p3 = pneg %p792_p5 }
 0x293   : > { %1005 = dma.done.wait (%p793_p3), %s604_s14, 128  }
 0x294   : > { %1007 = vsyncadd (%p793_p3), %s604_s14, 4294967168  ;;  %p21_p7 = scmp.ge.s32.totalorder %s1150_s9, 4   ;;  %s1299_s21 = smov %s1014_s22 }
 0x295   : > { %s1300_s22 = smov %s1018_s23  ;;  %s1301_s23 = smov %s1160_s11 }
 0x296   : > { %s1302_s24 = smov %s1150_s9  ;;  %23 = sbr.rel (!%p21_p7) target bundleno = 9 (0x9), region = 101 }
 0x29b   :  { %609 = vsyncpa [#allocation3], 1 }
 0x29c   :  { %611 = vsyncpa [#allocation3 + $0x1], 1 }
 0x29d   :  { %612 = vsyncpa [#allocation6], 1 }
 0x29e   :  { %613 = vsyncpa [#allocation9], 1 }
 0x29f   :  { %614 = vsyncpa [#allocation4], 1 }
 0x2a0   :  { %616 = vsyncpa [#allocation4 + $0x1], 1 }

</bundles_post_ra>
